<compile_context>
chip_gen: v6e
topology: v6e:2x2x1
jax: 0.10.0
libtpu: 0.0.40
codegen_flags: <defaults>
</compile_context>

<pallas_src>
import functools
import math

import jax
import jax.numpy as jnp
from jax.experimental import pallas as pl
from jax.experimental.pallas import tpu as pltpu

_LOG_1E4 = math.log(1.0e4)  # -log(clip(one_hot, 1e-4, 1)) for every off-label entry


def _sce_kernel(logits_ref, labels_ref, partial_ref, *, alpha, beta, n_total, tile_n):
    i = pl.program_id(0)

    logits = logits_ref[...].astype(jnp.float32)            # (C, Tn)  in-register upcast
    labels = labels_ref[...]                                 # (1, Tn)  int32
    c, tn = logits.shape

    # Mask lanes past the true batch size (128-pad and/or ragged last tile).
    row_ids = jax.lax.broadcasted_iota(jnp.int32, (1, tn), 1) + i * tile_n
    valid = row_ids < n_total                                # (1, Tn) bool

    # Stable log-sum-exp over the class (sublane) axis.
    m = jnp.max(logits, axis=0, keepdims=True)               # (1, Tn)
    shifted = logits - m                                     # (C, Tn)
    exp = jnp.exp(shifted)                                   # (C, Tn)  (EUP)
    sumexp = jnp.sum(exp, axis=0, keepdims=True)             # (1, Tn)

    # Label-selection mask via class-axis iota (no float one-hot materialised).
    class_ids = jax.lax.broadcasted_iota(jnp.int32, (c, tn), 0)
    is_label = class_ids == labels                           # (C, Tn) bool
    shifted_label = jnp.sum(jnp.where(is_label, shifted, 0.0), axis=0, keepdims=True)

    # ---- CE:  ce_i = log(sumexp_i) - shifted[label_i] ----
    ce_per = jnp.log(sumexp) - shifted_label                 # (1, Tn)

    # ---- RCE (analytic form, no (C, Tn) log) ----
    inv_sumexp = pl.reciprocal(sumexp, approx=True)          # EUP slot, ~free
    probs = jnp.clip(exp * inv_sumexp, 1e-7, 1.0)            # (C, Tn)
    sum_probs = jnp.sum(probs, axis=0, keepdims=True)        # (1, Tn)
    # Reuse the CE gather: exp(shifted_label) == exp[label], so no second (C, Tn) select+reduce.
    p_label = jnp.clip(jnp.exp(shifted_label) * inv_sumexp, 1e-7, 1.0)   # (1, Tn)
    rce_per = jnp.float32(_LOG_1E4) * (sum_probs - p_label)  # (1, Tn)

    per_example = jnp.float32(alpha) * ce_per + jnp.float32(beta) * rce_per
    per_example = jnp.where(valid, per_example, 0.0)
    partial_ref[...] = jnp.sum(per_example, axis=1, keepdims=True)   # (1, 1) per-tile partial


def _round_up(x, m):
    return (x + m - 1) // m * m


def sce_loss(pred, labels, *, alpha=0.1, beta=1.0, num_classes=10, tile_n=32768):
    """pred: (N, C) logits (any float dtype, bf16 OK); labels: (N,) int class ids -> scalar f32."""
    n, c = pred.shape
    if c != num_classes:
        raise ValueError(f"pred has {c} classes but num_classes={num_classes}")

    # Lane-dense layout: classes on sublanes, batch on lanes.  Native dtype kept.
    logits_t = jnp.transpose(pred)                        # (C, N)
    labels_row = labels.astype(jnp.int32).reshape(1, n)   # (1, N)

    # Pad only up to a 128-lane multiple (and only if misaligned); ragged last tiles
    # beyond that are handled by Pallas block padding + the in-kernel validity mask.
    n_pad = _round_up(n, 128)
    if n_pad != n:
        logits_t = jnp.pad(logits_t, ((0, 0), (0, n_pad - n)))
        labels_row = jnp.pad(labels_row, ((0, 0), (0, n_pad - n)))

    tile = min(_round_up(tile_n, 128), n_pad)
    num_tiles = pl.cdiv(n_pad, tile)

    kernel = functools.partial(
        _sce_kernel, alpha=float(alpha), beta=float(beta), n_total=n, tile_n=tile
    )

    partials = pl.pallas_call(
        kernel,
        out_shape=jax.ShapeDtypeStruct((num_tiles, 1, 1), jnp.float32),
        grid_spec=pltpu.PrefetchScalarGridSpec(
            num_scalar_prefetch=0,
            grid=(num_tiles,),
            in_specs=[
                pl.BlockSpec((c, tile), lambda i: (0, i)),   # logits tile, batch lane-dense
                pl.BlockSpec((1, tile), lambda i: (0, i)),   # labels tile, lane-dense row
            ],
            out_specs=pl.BlockSpec((None, 1, 1), lambda i: (i, 0, 0)),  # per-tile partial sum
        ),
        compiler_params=pltpu.CompilerParams(
            dimension_semantics=("parallel",),         # independent batch tiles (v7x megacore)
            vmem_limit_bytes=16 * 1024 * 1024,         # actual use ~4.3 MiB, fits v5e/v6e/v7x
        ),
    )(logits_t, labels_row)

    # Final reduction over the (tiny) per-tile partials + mean scaling in the wrapper.
    return jnp.sum(partials) * jnp.float32(1.0 / n)


def sce_loss_ref(pred, labels, *, alpha=0.1, beta=1.0, num_classes=10):
    """Pure-JAX reference mirroring the PyTorch module (computed in f32)."""
    pred = pred.astype(jnp.float32)
    log_probs = jax.nn.log_softmax(pred, axis=1)
    one_hot = jax.nn.one_hot(labels, num_classes, dtype=jnp.float32)
    ce = -jnp.mean(jnp.sum(one_hot * log_probs, axis=1))
    probs = jnp.clip(jax.nn.softmax(pred, axis=1), 1e-7, 1.0)
    label_clamped = jnp.clip(one_hot, 1e-4, 1.0)
    rce = -jnp.sum(probs * jnp.log(label_clamped), axis=1)
    return alpha * ce + beta * jnp.mean(rce)


if __name__ == "__main__":
    key = jax.random.PRNGKey(0)
    k1, k2, k3, k4 = jax.random.split(key, 4)
    alpha, beta = 0.1, 1.0
    C = 10  # module default num_classes

    # Tolerance: pl.reciprocal(approx=True) introduces ~1e-4 relative error in probs.
    RTOL, ATOL = 2e-3, 2e-3

    # Case 1: tiny batch (single tile, lane-pad + tail masking).
    N1 = 8
    pred1 = jax.random.normal(k1, (N1, C), dtype=jnp.float32) * 3.0
    lab1 = jax.random.randint(k2, (N1,), 0, C, dtype=jnp.int32)
    out1 = jax.block_until_ready(sce_loss(pred1, lab1, alpha=alpha, beta=beta, num_classes=C))
    ref1 = sce_loss_ref(pred1, lab1, alpha=alpha, beta=beta, num_classes=C)
    assert jnp.allclose(out1, ref1, rtol=RTOL, atol=ATOL), (out1, ref1)

    # Case 2: multi-tile batch (exercises per-tile partials across a parallel grid + tail mask).
    N2 = 300
    pred2 = jax.random.normal(k3, (N2, C), dtype=jnp.float32) * 2.0
    lab2 = jax.random.randint(k4, (N2,), 0, C, dtype=jnp.int32)
    out2 = jax.block_until_ready(
        sce_loss(pred2, lab2, alpha=alpha, beta=beta, num_classes=C, tile_n=128)
    )
    ref2 = sce_loss_ref(pred2, lab2, alpha=alpha, beta=beta, num_classes=C)
    assert jnp.allclose(out2, ref2, rtol=RTOL, atol=ATOL), (out2, ref2)

    # Case 3: native bf16 logits stream straight into the kernel (no wrapper upcast).
    pred3 = pred2.astype(jnp.bfloat16)
    out3 = jax.block_until_ready(sce_loss(pred3, lab2, alpha=alpha, beta=beta, num_classes=C))
    ref3 = sce_loss_ref(pred3.astype(jnp.float32), lab2, alpha=alpha, beta=beta, num_classes=C)
    assert jnp.allclose(out3, ref3, rtol=RTOL, atol=ATOL), (out3, ref3)

    print("KERNEL_OK")
</pallas_src>

<mosaic_0001>
module attributes {stable_mosaic.version = 11 : i64} {
  func.func @_sce_kernel(%arg0: i32, %arg1: memref<10x128xf32, #tpu.memory_space<vmem>>, %arg2: memref<1x128xi32, #tpu.memory_space<vmem>>, %arg3: memref<1x1x1xf32, #tpu.memory_space<vmem>>) attributes {dimension_semantics = [#tpu.dimension_semantics<parallel>], iteration_bounds = array<i64: 1>, scalar_prefetch = 0 : i64, scratch_operands = 0 : i64, tpu.core_type = #tpu.core_type<tc>, window_params = [{transform_indices = @transform_0, window_bounds = array<i64: 10, 128>}, {transform_indices = @transform_1, window_bounds = array<i64: 1, 128>}, {transform_indices = @transform_2, window_bounds = array<i64: 1, 1, 1>}]} {
    %c0 = arith.constant 0 : index
    %c0_0 = arith.constant 0 : index
    %0 = vector.load %arg1[%c0, %c0_0] : memref<10x128xf32, #tpu.memory_space<vmem>>, vector<10x128xf32>
    %c0_1 = arith.constant 0 : index
    %c0_2 = arith.constant 0 : index
    %1 = vector.load %arg2[%c0_1, %c0_2] : memref<1x128xi32, #tpu.memory_space<vmem>>, vector<1x128xi32>
    %2 = tpu.iota {dimensions = array<i32: 1>} : vector<1x128xi32>
    %c128_i32 = arith.constant 128 : i32
    %3 = arith.muli %arg0, %c128_i32 : i32
    %4 = vector.broadcast %3 : i32 to vector<1x128xi32>
    %5 = arith.addi %2, %4 : vector<1x128xi32>
    %c8_i32 = arith.constant 8 : i32
    %6 = vector.broadcast %c8_i32 : i32 to vector<1x128xi32>
    %7 = arith.cmpi slt, %5, %6 : vector<1x128xi32>
    %cst = arith.constant dense<0xFF800000> : vector<128xf32>
    %8 = vector.multi_reduction <maximumf>, %0, %cst [0] : vector<10x128xf32> to vector<128xf32>
    %9 = vector.shape_cast %8 : vector<128xf32> to vector<1x128xf32>
    %10 = vector.broadcast %9 : vector<1x128xf32> to vector<10x128xf32>
    %11 = arith.subf %0, %10 : vector<10x128xf32>
    %12 = math.exp %11 : vector<10x128xf32>
    %cst_3 = arith.constant dense<0.000000e+00> : vector<128xf32>
    %13 = vector.multi_reduction <add>, %12, %cst_3 [0] : vector<10x128xf32> to vector<128xf32>
    %14 = vector.shape_cast %13 : vector<128xf32> to vector<1x128xf32>
    %15 = tpu.iota {dimensions = array<i32: 0>} : vector<10x128xi32>
    %16 = vector.broadcast %1 : vector<1x128xi32> to vector<10x128xi32>
    %17 = arith.cmpi eq, %15, %16 : vector<10x128xi32>
    %cst_4 = arith.constant 0.000000e+00 : f32
    %18 = vector.broadcast %cst_4 : f32 to vector<10x128xf32>
    %19 = arith.select %17, %11, %18 : vector<10x128xi1>, vector<10x128xf32>
    %cst_5 = arith.constant dense<0.000000e+00> : vector<128xf32>
    %20 = vector.multi_reduction <add>, %19, %cst_5 [0] : vector<10x128xf32> to vector<128xf32>
    %21 = vector.shape_cast %20 : vector<128xf32> to vector<1x128xf32>
    %22 = math.log %14 : vector<1x128xf32>
    %23 = arith.subf %22, %21 : vector<1x128xf32>
    %24 = tpu.reciprocal %14 {approx = true} : vector<1x128xf32> -> vector<1x128xf32>
    %25 = vector.broadcast %24 : vector<1x128xf32> to vector<10x128xf32>
    %26 = arith.mulf %12, %25 : vector<10x128xf32>
    %cst_6 = arith.constant 1.000000e-07 : f32
    %cst_7 = arith.constant 1.000000e+00 : f32
    %27 = vector.broadcast %cst_6 : f32 to vector<10x128xf32>
    %28 = arith.maximumf %27, %26 : vector<10x128xf32>
    %29 = vector.broadcast %cst_7 : f32 to vector<10x128xf32>
    %30 = arith.minimumf %29, %28 : vector<10x128xf32>
    %cst_8 = arith.constant dense<0.000000e+00> : vector<128xf32>
    %31 = vector.multi_reduction <add>, %30, %cst_8 [0] : vector<10x128xf32> to vector<128xf32>
    %32 = vector.shape_cast %31 : vector<128xf32> to vector<1x128xf32>
    %33 = math.exp %21 : vector<1x128xf32>
    %34 = arith.mulf %33, %24 : vector<1x128xf32>
    %cst_9 = arith.constant 1.000000e-07 : f32
    %cst_10 = arith.constant 1.000000e+00 : f32
    %35 = vector.broadcast %cst_9 : f32 to vector<1x128xf32>
    %36 = arith.maximumf %35, %34 : vector<1x128xf32>
    %37 = vector.broadcast %cst_10 : f32 to vector<1x128xf32>
    %38 = arith.minimumf %37, %36 : vector<1x128xf32>
    %39 = arith.subf %32, %38 : vector<1x128xf32>
    %cst_11 = arith.constant 9.21034049 : f32
    %40 = vector.broadcast %cst_11 : f32 to vector<1x128xf32>
    %41 = arith.mulf %40, %39 : vector<1x128xf32>
    %cst_12 = arith.constant 1.000000e-01 : f32
    %42 = vector.broadcast %cst_12 : f32 to vector<1x128xf32>
    %43 = arith.mulf %42, %23 : vector<1x128xf32>
    %cst_13 = arith.constant 1.000000e+00 : f32
    %44 = vector.broadcast %cst_13 : f32 to vector<1x128xf32>
    %45 = arith.mulf %44, %41 : vector<1x128xf32>
    %46 = arith.addf %43, %45 : vector<1x128xf32>
    %cst_14 = arith.constant 0.000000e+00 : f32
    %47 = vector.broadcast %cst_14 : f32 to vector<1x128xf32>
    %48 = arith.select %7, %46, %47 : vector<1x128xi1>, vector<1x128xf32>
    %cst_15 = arith.constant dense<0.000000e+00> : vector<1xf32>
    %49 = vector.multi_reduction <add>, %48, %cst_15 [1] : vector<1x128xf32> to vector<1xf32>
    %50 = vector.shape_cast %49 : vector<1xf32> to vector<1x1xf32>
    %c0_16 = arith.constant 0 : index
    %c0_17 = arith.constant 0 : index
    %c0_18 = arith.constant 0 : index
    %51 = vector.load %arg3[%c0_16, %c0_17, %c0_18] : memref<1x1x1xf32, #tpu.memory_space<vmem>>, vector<1x1x1xf32>
    %52 = vector.shape_cast %51 : vector<1x1x1xf32> to vector<1x1xf32>
    %53 = vector.shape_cast %50 : vector<1x1xf32> to vector<1x1x1xf32>
    tpu.vector_store %arg3[%c0_16, %c0_17, %c0_18], %53 {strides = array<i32>} : memref<1x1x1xf32, #tpu.memory_space<vmem>>, vector<1x1x1xf32>,
    return
  }
  func.func @transform_0(%arg0: i32) -> (i32, i32) {
    %c0_i32 = arith.constant 0 : i32
    %c0_i32_0 = arith.constant 0 : i32
    return %c0_i32, %arg0 : i32, i32
  }
  func.func @transform_1(%arg0: i32) -> (i32, i32) {
    %c0_i32 = arith.constant 0 : i32
    %c0_i32_0 = arith.constant 0 : i32
    return %c0_i32, %arg0 : i32, i32
  }
  func.func @transform_2(%arg0: i32) -> (i32, i32, i32) {
    %c0_i32 = arith.constant 0 : i32
    %c0_i32_0 = arith.constant 0 : i32
    %c0_i32_1 = arith.constant 0 : i32
    return %arg0, %c0_i32, %c0_i32_0 : i32, i32, i32
  }
}

</mosaic_0001>

<bundles_post_ra>
// kernel: tpu_custom_call.1
= control target key start
LH: loop header
LB: loop body
LE: loop exit
PB: predicated region body
PF: predicated region fallthrough
CT: control target
= control target key end

     0   :  { %7 = vsyncpa [#allocation3], 0  ;;  %s217_s0 = inlined_call_operand.hbm [shape: f32[10,128], index: 0, kind: input, shape index: {}]   ;;  %s218_s1 = inlined_call_operand.vmem [shape: s32[1,128], index: 1, kind: input, shape index: {}]   ;;  %s219_s2 = inlined_call_operand.hbm [shape: f32[1,1,1], index: 2, kind: output, shape index: {}]  }
   0x1   :  { %8 = vsyncpa [#allocation4], 0  ;;  %s183_s9 = smov [#allocation2]  }
   0x2   :  { %s14_s10 = sshll.u32 %s183_s9, 4  ;;  %s15_s10 = int_to_ptr.vmem [resolvable:$true] %s14_s10 }
   0x3   :  { %s147_s11 = scalar_lea.vmem %s15_s10, 256  ;;  %p152_p1 = scmp.lt.s32.totalorder %s15_s10, %s15_s10 }
   0x4   :  { %p148_p0 = scmp.ne.s32.totalorder %s15_s10, %s147_s11  ;;  %p153_p2 = scmp.lt.s32.totalorder %s147_s11, %s147_s11 }
   0x6   :  { %p154_p3 = por %p153_p2, %p152_p1 }
   0x8   :  { %p155_p4 = pnand %p154_p3, %p148_p0 }
   0xa   :  { %158 = shalt.err (!%p155_p4)
}
   0xb   :  { %s184_s12 = smov 128   ;;  %s185_s13 = smov 8  }
   0xc   :  { %20 = dma.hbm_to_vmem [thread:$0]  %s217_s0, 256, %s15_s10, [#allocation3], %s184_s12, %s184_s12, %s185_s13  }
   0xd   :  { %179 = dma.done.wait [#allocation3], 256  }
   0xe   :  { %180 = vsyncadd [#allocation3], 4294967040  ;;  %vm35_vm0 = vcmask 1041408   ;;  %v26_v0 = vld [vmem:[#allocation2] sm:$0xff]  ;;  %v27_v1 = vld [vmem:[#allocation2 + $0x8] sm:$0x3]  ;;  %v29_v5 = vlaneseq }
   0xf   :  { %v36_v2 = vsel %vm35_vm0, %v27_v1, -inf  ;;  %v124_v12 = vld [vmem:[%s218_s1] ss:$0 sm:$0xff]  ;;  %s186_s0 = smov [#allocation5]   ;;  %vm107_vm4 = vcmask 0  }
  0x10   :  { %v37_v3 = vmax.f32 %v26_v0, %v36_v2  ;;  %v59_v8 = vshrl.u32 %v29_v5, 7  ;;  %v30_v61 = vand.u32 127, %v29_v5  ;;  %s115_s1 = sshll.u32 %s186_s0, 4  ;;  %s116_s1 = int_to_ptr.vmem [resolvable:$true] %s115_s1 }
  0x11   :  { %s159_s18 = scalar_lea.vmem %s116_s1, 16  ;;  %s163_s19 = scalar_lea.vmem %s116_s1, 32 }
  0x12   :  { %v38_v4 = vrot.slane %v37_v3, 4  ;;  %v60_v11 = vadd.s32 8, %v59_v8  ;;  %vm65_vm2 = vcmp.eq.s32.totalorder %v59_v8, %v124_v12  ;;  %vm34_vm3 = vcmp.lt.s32.totalorder %v30_v61, 8  ;;  %p160_p5 = scmp.ne.s32.totalorder %s116_s1, %s159_s18  ;;  %p164_p6 = scmp.lt.s32.totalorder %s116_s1, %s116_s1 }
  0x13   :  { %p165_p7 = scmp.lt.s32.totalorder %s163_s19, %s159_s18 }
  0x14   :  { %v39_v6 = vmax.f32 %v37_v3, %v38_v4  ;;  %vm66_vm1 = vcmp.eq.s32.totalorder %v60_v11, %v124_v12 }
  0x15   :  { %p166_p8 = por %p165_p7, %p164_p6 }
  0x16   :  { %v40_v7 = vrot.slane %v39_v6, 2 }
  0x17   :  { %p167_p9 = pnand %p166_p8, %p160_p5 }
  0x18   :  { %v41_v9 = vmax.f32 %v39_v6, %v40_v7 }
  0x1a   :  { %v42_v10 = vrot.slane %v41_v9, 1 }
  0x1c   :  { %v43_v13 = vmax.f32 %v41_v9, %v42_v10 }
  0x1e   :  { %v44_v14 = vsub.f32 %v26_v0, %v43_v13  ;;  %v45_v15 = vsub.f32 %v27_v1, %v43_v13 }
  0x20   :  { %v46_v16 = vmul.f32 1.442695, %v44_v14  ;;  %v48_v17 = vmul.f32 1.442695, %v45_v15  ;;  %v68_v18 = vsel %vm66_vm1, %v45_v15, 0.0  ;;  %v67_v19 = vsel %vm65_vm2, %v44_v14, 0.0 }
  0x21   :  { %v69_v20 = vsel %vm35_vm0, %v68_v18, 0.0 }
  0x22   :  { %129 = vpow2.f32 %v46_v16  ;;  %v70_v21 = vadd.f32 %v69_v20, %v67_v19 }
  0x23   :  { %131 = vpow2.f32 %v48_v17 }
  0x24   :  { %v71_v22 = vrot.slane %v70_v21, 4 }
  0x26   :  { %v72_v25 = vadd.f32 %v71_v22, %v70_v21 }
  0x28   :  { %v73_v29 = vrot.slane %v72_v25, 2 }
  0x2a   :  { %v74_v32 = vadd.f32 %v73_v29, %v72_v25 }
  0x2c   :  { %v75_v35 = vrot.slane %v74_v32, 1 }
  0x2e   :  { %v76_v37 = vadd.f32 %v75_v35, %v74_v32 }
  0x2f   :  { %v130_v23 = vpop.eup %129 }
  0x30   :  { %v132_v24 = vpop.eup %131  ;;  %v95_v38 = vmul.f32 1.442695, %v76_v37 }
  0x31   :  { %v50_v26 = vsel %vm35_vm0, %v132_v24, 0.0 }
  0x32   :  { %v51_v27 = vadd.f32 %v130_v23, %v50_v26 }
  0x34   :  { %v52_v28 = vrot.slane %v51_v27, 4 }
  0x36   :  { %v53_v30 = vadd.f32 %v52_v28, %v51_v27 }
  0x38   :  { %v54_v31 = vrot.slane %v53_v30, 2 }
  0x3a   :  { %v55_v33 = vadd.f32 %v54_v31, %v53_v30 }
  0x3c   :  { %v56_v34 = vrot.slane %v55_v33, 1 }
  0x3e   :  { %v57_v36 = vadd.f32 %v56_v34, %v55_v33 }
  0x40   :  { %133 = vrcp.f32 %v57_v36 }
  0x41   :  { %135 = vpow2.f32 %v95_v38 }
  0x42   :  { %137 = vlog2.f32 %v57_v36 }
  0x4d   :  { %v134_v39 = vpop.eup %133 }
  0x4e   :  { %v81_v40 = vmul.f32 %v134_v39, %v130_v23  ;;  %v82_v41 = vmul.f32 %v134_v39, %v132_v24  ;;  %v136_v46 = vpop.eup %135 }
  0x4f   :  { %v97_v50 = vmul.f32 %v136_v46, %v134_v39  ;;  %v138_v51 = vpop.eup %137 }
  0x50   :  { %v83_v42 = vmax.f32 %v81_v40, 1e-07  ;;  %v84_v43 = vmax.f32 %v82_v41, 1e-07  ;;  %v78_v53 = vmul.f32 0.6931472, %v138_v51 }
  0x51   :  { %v98_v55 = vmax.f32 %v97_v50, 1e-07 }
  0x52   :  { %v85_v44 = vmin.f32 %v83_v42, 1.0  ;;  %v86_v45 = vmin.f32 %v84_v43, 1.0  ;;  %v79_v57 = vsub.f32 %v78_v53, %v76_v37 }
  0x53   :  { %v99_v59 = vmin.f32 %v98_v55, 1.0 }
  0x54   :  { %v87_v47 = vsel %vm35_vm0, %v86_v45, 0.0  ;;  %v102_v63 = vmul.f32 0.1, %v79_v57 }
  0x55   :  { %v88_v48 = vadd.f32 %v87_v47, %v85_v44 }
  0x57   :  { %v89_v49 = vrot.slane %v88_v48, 4 }
  0x59   :  { %v90_v52 = vadd.f32 %v89_v49, %v88_v48 }
  0x5b   :  { %v91_v54 = vrot.slane %v90_v52, 2 }
  0x5d   :  { %v92_v56 = vadd.f32 %v91_v54, %v90_v52 }
  0x5f   :  { %v93_v58 = vrot.slane %v92_v56, 1 }
  0x61   :  { %v94_v60 = vadd.f32 %v93_v58, %v92_v56 }
  0x63   :  { %v100_v62 = vsub.f32 %v94_v60, %v99_v59 }
  0x65   :  { %v101_v0 = vmul.f32 9.2103405, %v100_v62 }
  0x67   :  { %v103_v1 = vadd.f32 %v102_v63, %v101_v0 }
  0x69   :  { %v104_v2 = vsel %vm34_vm3, %v103_v1, 0.0 }
  0x6a   :  { %105 = vadd.xlane.f32.xlu0 %v104_v2 }
  0xf3   :  { %v106_v3 = vpop.xlane.xlu0 %105 }
  0xf4   :  { %108 = vst.msk [vmem:[#allocation5] sm:$0x1] %vm107_vm4, %v106_v3 }
  0xf5   :  { %170 = shalt.err (!%p167_p9)
}
  0xf6   :  { %118 = dma.vmem_to_hbm [thread:$0]  %s116_s1, 16, %s219_s2, [#allocation4]  }
  0xf7   :  { %181 = dma.done.wait [#allocation4], 16  }
  0xf8   :  { %182 = vsyncadd [#allocation4], 4294967280 }
  0xf9   :  { %122 = vsyncpa [#allocation3], 1 }
  0xfa   :  { %123 = vsyncpa [#allocation4], 1 }

</bundles_post_ra>
